<compile_context>
chip_gen: v6e
topology: v6e:2x2x1
jax: 0.10.0
libtpu: 0.0.40
codegen_flags: <defaults>
</compile_context>

<pallas_src>
import math

import jax
import jax.numpy as jnp
from jax.experimental import pallas as pl
from jax.experimental.pallas import tpu as pltpu


def _make_mha_kernel(B, T, d_in, d_out, num_heads):
    H = num_heads
    hd = d_out // H
    G = B * H
    scale = 1.0 / math.sqrt(hd)

    def mha_kernel(x_ref, wqkv_ref, wo_ref, bo_ref, o_ref):
        # ---- fused QKV projection: one MXU push --------------------------
        # x arrives fp32; cast to bf16 on the VPU here (no wrapper cast pass).
        x = x_ref[...].reshape(B * T, d_in).astype(jnp.bfloat16)    # (B*T, d_in)
        qkv = jnp.dot(x, wqkv_ref[...],
                      preferred_element_type=jnp.float32)           # (B*T, 3*d_out) f32

        # ---- split heads: (B*H, T, hd); fold softmax scale into q --------
        def to_heads(z_bf16):
            z = z_bf16.reshape(B, T, H, hd)
            z = jnp.swapaxes(z, 1, 2)                               # (B, H, T, hd)
            return z.reshape(G, T, hd)

        q = to_heads((qkv[:, :d_out] * scale).astype(jnp.bfloat16))
        k = to_heads(qkv[:, d_out:2 * d_out].astype(jnp.bfloat16))
        v = to_heads(qkv[:, 2 * d_out:].astype(jnp.bfloat16))

        # ---- attention scores + in-place causal mask (fp32) --------------
        s = jnp.einsum("gqe,gke->gqk", q, k,
                       preferred_element_type=jnp.float32)          # (G, T, T)
        row = jax.lax.broadcasted_iota(jnp.int32, (T, T), 0)
        col = jax.lax.broadcasted_iota(jnp.int32, (T, T), 1)
        s = jnp.where((col <= row)[None], s, -1e30)   # finite: exp underflows to 0

        # ---- numerically stable softmax; EUP approx reciprocal -----------
        m = jnp.max(s, axis=-1, keepdims=True)
        p = jnp.exp(s - m)
        l = jnp.sum(p, axis=-1, keepdims=True)
        p = (p * pl.reciprocal(l, approx=True)).astype(jnp.bfloat16)

        # ---- per-head context, heads concatenated back onto lanes --------
        ctx = jnp.einsum("gqk,gke->gqe", p, v,
                         preferred_element_type=jnp.float32)        # (G, T, hd)
        ctx = ctx.reshape(B, H, T, hd)
        ctx = jnp.swapaxes(ctx, 1, 2).reshape(B * T, d_out)         # (B*T, d_out)
        ctx = ctx.astype(jnp.bfloat16)

        # ---- single dense out-projection + bias ---------------------------
        out = jnp.dot(ctx, wo_ref[...],
                      preferred_element_type=jnp.float32) + bo_ref[...]
        o_ref[...] = out.reshape(B, T, d_out).astype(o_ref.dtype)

    return mha_kernel


def prepare_mha_params(wq, wk, wv, wo, bo):
    """One-time (init-time) layout plumbing: fused bf16 QKV weight, bf16 W_out."""
    wqkv = jnp.concatenate([wq, wk, wv], axis=1).astype(jnp.bfloat16)  # (d_in, 3*d_out)
    return wqkv, wo.astype(jnp.bfloat16), bo.astype(jnp.float32)


def multi_head_causal_attention(x, wqkv, wo, bo, *, num_heads):
    """x: (B, T, d_in) fp32; wqkv: (d_in, 3*d_out) bf16; wo: (d_out, d_out) bf16;
    bo: (1, d_out) fp32."""
    B, T, d_in = x.shape
    d_out = wo.shape[0]

    kernel = _make_mha_kernel(B, T, d_in, d_out, num_heads)

    # Everything fits trivially in VMEM -> no grid, whole arrays resident.
    vmem = pl.BlockSpec(memory_space=pltpu.MemorySpace.VMEM)
    return pl.pallas_call(
        kernel,
        out_shape=jax.ShapeDtypeStruct((B, T, d_out), x.dtype),
        in_specs=[vmem, vmem, vmem, vmem],
        out_specs=vmem,
    )(x, wqkv, wo, bo)


def _reference(x, wq, wk, wv, wo, bo, *, num_heads):
    """Pure-JAX fp32 reference mirroring the PyTorch forward."""
    B, T, d_in = x.shape
    d_out = wq.shape[1]
    hd = d_out // num_heads
    q = (x @ wq).reshape(B, T, num_heads, hd).transpose(0, 2, 1, 3)
    k = (x @ wk).reshape(B, T, num_heads, hd).transpose(0, 2, 1, 3)
    v = (x @ wv).reshape(B, T, num_heads, hd).transpose(0, 2, 1, 3)
    s = jnp.einsum("bhqd,bhkd->bhqk", q, k)
    mask = jnp.triu(jnp.ones((T, T), dtype=bool), k=1)
    s = jnp.where(mask[None, None], -jnp.inf, s)
    w = jax.nn.softmax(s / math.sqrt(hd), axis=-1)
    ctx = jnp.einsum("bhqk,bhkd->bhqd", w, v).transpose(0, 2, 1, 3).reshape(B, T, d_out)
    return ctx @ wo + bo[0]


if __name__ == "__main__":
    # Small shapes consistent with the module: batch=2, seq=8, d_in=32,
    # d_out=32, num_heads=4 (head_dim=8), context_length=8, dropout=0.0.
    B, T, D_IN, D_OUT, NUM_HEADS = 2, 8, 32, 32, 4

    key = jax.random.PRNGKey(0)
    kx, kq, kk, kv, ko, kb = jax.random.split(key, 6)

    x = jax.random.normal(kx, (B, T, D_IN), dtype=jnp.float32)
    wq = jax.random.normal(kq, (D_IN, D_OUT), dtype=jnp.float32) / math.sqrt(D_IN)
    wk = jax.random.normal(kk, (D_IN, D_OUT), dtype=jnp.float32) / math.sqrt(D_IN)
    wv = jax.random.normal(kv, (D_IN, D_OUT), dtype=jnp.float32) / math.sqrt(D_IN)
    wo = jax.random.normal(ko, (D_OUT, D_OUT), dtype=jnp.float32) / math.sqrt(D_OUT)
    bo = jax.random.normal(kb, (1, D_OUT), dtype=jnp.float32) * 0.01

    # Init-time weight prep (hoisted out of the per-call path).
    wqkv_p, wo_p, bo_p = prepare_mha_params(wq, wk, wv, wo, bo)

    out = multi_head_causal_attention(x, wqkv_p, wo_p, bo_p, num_heads=NUM_HEADS)
    out = jax.block_until_ready(out)

    ref = _reference(x, wq, wk, wv, wo, bo, num_heads=NUM_HEADS)
    assert out.shape == (B, T, D_OUT)
    # bf16 MXU operands + approx reciprocal -> loose-but-meaningful tolerance.
    assert jnp.allclose(out, ref, atol=5e-2, rtol=5e-2), (
        "mismatch vs reference, max abs err = "
        f"{float(jnp.max(jnp.abs(out - ref)))}"
    )

    print("KERNEL_OK")
</pallas_src>

<mosaic_0001>
module attributes {stable_mosaic.version = 11 : i64} {
  func.func @mha_kernel(%arg0: memref<2x8x32xf32, #tpu.memory_space<vmem>>, %arg1: memref<32x96xbf16, #tpu.memory_space<vmem>>, %arg2: memref<32x32xbf16, #tpu.memory_space<vmem>>, %arg3: memref<1x32xf32, #tpu.memory_space<vmem>>, %arg4: memref<2x8x32xf32, #tpu.memory_space<vmem>>) attributes {dimension_semantics = [], scalar_prefetch = 0 : i64, scratch_operands = 0 : i64, tpu.core_type = #tpu.core_type<tc>} {
    %c0 = arith.constant 0 : index
    %c0_0 = arith.constant 0 : index
    %c0_1 = arith.constant 0 : index
    %0 = vector.load %arg0[%c0, %c0_0, %c0_1] : memref<2x8x32xf32, #tpu.memory_space<vmem>>, vector<2x8x32xf32>
    %1 = vector.shape_cast %0 : vector<2x8x32xf32> to vector<16x32xf32>
    %2 = arith.truncf %1 : vector<16x32xf32> to vector<16x32xbf16>
    %c0_2 = arith.constant 0 : index
    %c0_3 = arith.constant 0 : index
    %3 = vector.load %arg1[%c0_2, %c0_3] : memref<32x96xbf16, #tpu.memory_space<vmem>>, vector<32x96xbf16>
    %cst = arith.constant dense<0.000000e+00> : vector<16x96xf32>
    %4 = tpu.matmul %2, %3, %cst {dimension_numbers = #tpu.dot_dimension_numbers<[1], [0], [0], [1], [0, 0, 1, 1], [], []>} : vector<16x32xbf16>, vector<32x96xbf16>, vector<16x96xf32> -> vector<16x96xf32>
    %5 = vector.extract_strided_slice %4 {offsets = [0, 0], sizes = [16, 32], strides = [1, 1]} : vector<16x96xf32> to vector<16x32xf32>
    %cst_4 = arith.constant 0.353553385 : f32
    %6 = vector.broadcast %cst_4 : f32 to vector<16x32xf32>
    %7 = arith.mulf %5, %6 : vector<16x32xf32>
    %8 = arith.truncf %7 : vector<16x32xf32> to vector<16x32xbf16>
    %9 = vector.shape_cast %8 : vector<16x32xbf16> to vector<2x8x4x8xbf16>
    %10 = tpu.transpose %9, [0, 2, 1, 3] : vector<2x8x4x8xbf16> -> vector<2x4x8x8xbf16>
    %11 = vector.shape_cast %10 : vector<2x4x8x8xbf16> to vector<8x8x8xbf16>
    %12 = vector.extract_strided_slice %4 {offsets = [0, 32], sizes = [16, 32], strides = [1, 1]} : vector<16x96xf32> to vector<16x32xf32>
    %13 = arith.truncf %12 : vector<16x32xf32> to vector<16x32xbf16>
    %14 = vector.shape_cast %13 : vector<16x32xbf16> to vector<2x8x4x8xbf16>
    %15 = tpu.transpose %14, [0, 2, 1, 3] : vector<2x8x4x8xbf16> -> vector<2x4x8x8xbf16>
    %16 = vector.shape_cast %15 : vector<2x4x8x8xbf16> to vector<8x8x8xbf16>
    %17 = vector.extract_strided_slice %4 {offsets = [0, 64], sizes = [16, 32], strides = [1, 1]} : vector<16x96xf32> to vector<16x32xf32>
    %18 = arith.truncf %17 : vector<16x32xf32> to vector<16x32xbf16>
    %19 = vector.shape_cast %18 : vector<16x32xbf16> to vector<2x8x4x8xbf16>
    %20 = tpu.transpose %19, [0, 2, 1, 3] : vector<2x8x4x8xbf16> -> vector<2x4x8x8xbf16>
    %21 = vector.shape_cast %20 : vector<2x4x8x8xbf16> to vector<8x8x8xbf16>
    "tpu.trace_start"() <{level = 10 : i32, message = "gqe,gke->gqk"}> : () -> ()
    %cst_5 = arith.constant dense<0.000000e+00> : vector<8x8x8xf32>
    %22 = tpu.matmul %11, %16, %cst_5 {dimension_numbers = #tpu.dot_dimension_numbers<[2], [2], [1], [1], [0, 0, 0, 1, 1, 1], [0], [0]>} : vector<8x8x8xbf16>, vector<8x8x8xbf16>, vector<8x8x8xf32> -> vector<8x8x8xf32>
    "tpu.trace_stop"() : () -> ()
    %23 = tpu.iota {dimensions = array<i32: 0>} : vector<8x8xi32>
    %24 = tpu.iota {dimensions = array<i32: 1>} : vector<8x8xi32>
    %25 = arith.cmpi sle, %24, %23 : vector<8x8xi32>
    %26 = vector.shape_cast %25 : vector<8x8xi1> to vector<1x8x8xi1>
    %cst_6 = arith.constant -1.000000e+30 : f32
    %27 = vector.shape_cast %26 : vector<1x8x8xi1> to vector<1x8x8xi1>
    %28 = vector.broadcast %27 : vector<1x8x8xi1> to vector<8x8x8xi1>
    %29 = vector.broadcast %cst_6 : f32 to vector<8x8x8xf32>
    %30 = arith.select %28, %22, %29 : vector<8x8x8xi1>, vector<8x8x8xf32>
    %cst_7 = arith.constant dense<0xFF800000> : vector<8x8xf32>
    %31 = vector.multi_reduction <maximumf>, %30, %cst_7 [2] : vector<8x8x8xf32> to vector<8x8xf32>
    %32 = vector.shape_cast %31 : vector<8x8xf32> to vector<8x8x1xf32>
    %33 = vector.broadcast %32 : vector<8x8x1xf32> to vector<8x8x8xf32>
    %34 = arith.subf %30, %33 : vector<8x8x8xf32>
    %35 = math.exp %34 : vector<8x8x8xf32>
    %cst_8 = arith.constant dense<0.000000e+00> : vector<8x8xf32>
    %36 = vector.multi_reduction <add>, %35, %cst_8 [2] : vector<8x8x8xf32> to vector<8x8xf32>
    %37 = vector.shape_cast %36 : vector<8x8xf32> to vector<8x8x1xf32>
    %38 = tpu.reciprocal %37 {approx = true} : vector<8x8x1xf32> -> vector<8x8x1xf32>
    %39 = vector.broadcast %38 : vector<8x8x1xf32> to vector<8x8x8xf32>
    %40 = arith.mulf %35, %39 : vector<8x8x8xf32>
    %41 = arith.truncf %40 : vector<8x8x8xf32> to vector<8x8x8xbf16>
    "tpu.trace_start"() <{level = 10 : i32, message = "gqk,gke->gqe"}> : () -> ()
    %cst_9 = arith.constant dense<0.000000e+00> : vector<8x8x8xf32>
    %42 = tpu.matmul %41, %21, %cst_9 {dimension_numbers = #tpu.dot_dimension_numbers<[2], [1], [1], [2], [0, 0, 0, 1, 1, 2], [0], [0]>} : vector<8x8x8xbf16>, vector<8x8x8xbf16>, vector<8x8x8xf32> -> vector<8x8x8xf32>
    "tpu.trace_stop"() : () -> ()
    %43 = vector.shape_cast %42 : vector<8x8x8xf32> to vector<2x4x8x8xf32>
    %44 = tpu.transpose %43, [0, 2, 1, 3] : vector<2x4x8x8xf32> -> vector<2x8x4x8xf32>
    %45 = vector.shape_cast %44 : vector<2x8x4x8xf32> to vector<16x32xf32>
    %46 = arith.truncf %45 : vector<16x32xf32> to vector<16x32xbf16>
    %c0_10 = arith.constant 0 : index
    %c0_11 = arith.constant 0 : index
    %47 = vector.load %arg2[%c0_10, %c0_11] : memref<32x32xbf16, #tpu.memory_space<vmem>>, vector<32x32xbf16>
    %cst_12 = arith.constant dense<0.000000e+00> : vector<16x32xf32>
    %48 = tpu.matmul %46, %47, %cst_12 {dimension_numbers = #tpu.dot_dimension_numbers<[1], [0], [0], [1], [0, 0, 1, 1], [], []>} : vector<16x32xbf16>, vector<32x32xbf16>, vector<16x32xf32> -> vector<16x32xf32>
    %c0_13 = arith.constant 0 : index
    %c0_14 = arith.constant 0 : index
    %49 = vector.load %arg3[%c0_13, %c0_14] : memref<1x32xf32, #tpu.memory_space<vmem>>, vector<1x32xf32>
    %50 = vector.broadcast %49 : vector<1x32xf32> to vector<16x32xf32>
    %51 = arith.addf %48, %50 : vector<16x32xf32>
    %52 = vector.shape_cast %51 : vector<16x32xf32> to vector<2x8x32xf32>
    %c0_15 = arith.constant 0 : index
    %c0_16 = arith.constant 0 : index
    %c0_17 = arith.constant 0 : index
    %53 = vector.load %arg4[%c0_15, %c0_16, %c0_17] : memref<2x8x32xf32, #tpu.memory_space<vmem>>, vector<2x8x32xf32>
    tpu.vector_store %arg4[%c0_15, %c0_16, %c0_17], %52 {strides = array<i32>} : memref<2x8x32xf32, #tpu.memory_space<vmem>>, vector<2x8x32xf32>,
    return
  }
}

</mosaic_0001>

<bundles_post_ra>
// kernel: tpu_custom_call.1
= control target key start
LH: loop header
LB: loop body
LE: loop exit
PB: predicated region body
PF: predicated region fallthrough
CT: control target
= control target key end

     0   :  { %9 = vsyncpa [#allocation3], 0  ;;  %s3022_s0 = inlined_call_operand.hbm [shape: f32[2,8,32], index: 0, kind: input, shape index: {}]   ;;  %s3023_s1 = inlined_call_operand.hbm [shape: bf16[32,96], index: 1, kind: input, shape index: {}]   ;;  %s3024_s2 = inlined_call_operand.hbm [shape: bf16[32,32], index: 2, kind: input, shape index: {}]   ;;  %s3025_s3 = inlined_call_operand.vmem [shape: f32[1,32], index: 3, kind: input, shape index: {}]   ;;  %s3026_s4 = inlined_call_operand.hbm [shape: f32[2,8,32], index: 4, kind: output, shape index: {}]  }
   0x1   :  { %10 = vsyncpa [#allocation6], 0 }
   0x2   :  { %11 = vsyncpa [#allocation4], 0  ;;  %s2566_s15 = smov [#allocation5]  }
   0x3   :  { %s29_s16 = sshll.u32 %s2566_s15, 4  ;;  %s30_s16 = int_to_ptr.vmem [resolvable:$true] %s29_s16 }
   0x4   :  { %s2488_s17 = scalar_lea.vmem %s30_s16, 256  ;;  %p2493_p1 = scmp.lt.s32.totalorder %s30_s16, %s30_s16 }
   0x5   :  { %p2489_p0 = scmp.ne.s32.totalorder %s30_s16, %s2488_s17  ;;  %p2494_p2 = scmp.lt.s32.totalorder %s2488_s17, %s2488_s17 }
   0x7   :  { %p2495_p3 = por %p2494_p2, %p2493_p1 }
   0x9   :  { %p2496_p4 = pnand %p2495_p3, %p2489_p0 }
   0xb   :  { %2499 = shalt.err (!%p2496_p4)
}
   0xc   :  { %s2567_s18 = smov 64   ;;  %s2568_s19 = smov 4  }
   0xd   :  { %35 = dma.hbm_to_vmem [thread:$0]  %s3023_s1, 256, %s30_s16, [#allocation6], %s2567_s18, %s2567_s18, %s2568_s19  }
   0xe   :  { %s2569_s22 = smov [#allocation2]  }
   0xf   :  { %s17_s23 = sshll.u32 %s2569_s22, 4  ;;  %s18_s23 = int_to_ptr.vmem [resolvable:$true] %s17_s23 }
  0x10   :  { %s2508_s24 = scalar_lea.vmem %s18_s23, 256  ;;  %p2513_p6 = scmp.lt.s32.totalorder %s18_s23, %s18_s23 }
  0x11   :  { %p2509_p5 = scmp.ne.s32.totalorder %s18_s23, %s2508_s24  ;;  %p2514_p7 = scmp.lt.s32.totalorder %s2508_s24, %s2508_s24 }
  0x13   :  { %p2515_p8 = por %p2514_p7, %p2513_p6 }
  0x15   :  { %p2516_p9 = pnand %p2515_p8, %p2509_p5 }
  0x17   :  { %2519 = shalt.err (!%p2516_p9)
}
  0x18   :  { %s2570_s25 = smov 128   ;;  %s2571_s26 = smov 8  }
  0x19   :  { %23 = dma.hbm_to_vmem [thread:$0]  %s3022_s0, 256, %s18_s23, [#allocation3], %s2570_s25, %s2570_s25, %s2571_s26  }
  0x1a   :  { %s2572_s1 = smov [#allocation7]  }
  0x1b   :  { %s41_s29 = sshll.u32 %s2572_s1, 4  ;;  %s42_s29 = int_to_ptr.vmem [resolvable:$true] %s41_s29 }
  0x1c   :  { %s2528_s30 = scalar_lea.vmem %s42_s29, 256  ;;  %p2533_p11 = scmp.lt.s32.totalorder %s42_s29, %s42_s29 }
  0x1d   :  { %p2529_p10 = scmp.ne.s32.totalorder %s42_s29, %s2528_s30  ;;  %p2534_p12 = scmp.lt.s32.totalorder %s2528_s30, %s2528_s30 }
  0x1f   :  { %p2535_p13 = por %p2534_p12, %p2533_p11 }
  0x21   :  { %p2536_p0 = pnand %p2535_p13, %p2529_p10 }
  0x23   :  { %2539 = shalt.err (!%p2536_p0)
}
  0x24   :  { %47 = dma.hbm_to_vmem [thread:$0]  %s3024_s2, 256, %s42_s29, [#allocation6], %s2567_s18, %s2567_s18, %s2568_s19  }
  0x25   :  { %2560 = dma.done.wait [#allocation3], 256  }
  0x26   :  { %2561 = vsyncadd [#allocation3], 4294967040 }
  0x27   :  { %2562 = dma.done.wait [#allocation6], 512  }
  0x28   :  { %2563 = vsyncadd [#allocation6], 4294966784  ;;  %v2573_v0 = vmov 0.0   ;;  %vm2574_vm0 = vmmov 0   ;;  %v2444_v1 = vld [vmem:[#allocation5 + $0x8] sm:$0xff]   ;;  %v2445_v2 = vld [vmem:[#allocation5] sm:$0xff]   ;;  %v160_v19 = vlaneseq }
  0x29   :  { %2298 = vmatprep.subr.bf16.mxu0 %v2573_v0  ;;  %2302 = vmatprep.mubr.msk.bf16.mxu0 %vm2574_vm0, %v2573_v0  ;;  %v60_v3 = vld [vmem:[#allocation2] sm:$0xff]  ;;  %v61_v4 = vld [vmem:[#allocation2 + $0x8] sm:$0xff]  ;;  %vm79_vm1 = vcmask 261120   ;;  %s2575_s0 = smov 104   ;;  %s2576_s2 = smov 120   ;;  %v2581_v26 = vmov 0  }
  0x2a   :  { %2306 = vmatprep.subr.bf16.mxu1 %v2573_v0  ;;  %2308 = vmatprep.mubr.msk.bf16.mxu1 %vm2574_vm0, %v2573_v0  ;;  %v62_v5 = vpack.c.bf16 %v61_v4, %v60_v3  ;;  %s2577_s7 = smov 96   ;;  %s2578_s8 = smov 112   ;;  %v2579_v17 = vmov 1983009808   ;;  %v2580_v20 = vmov 1934713408   ;;  %v2662_v27 = vpack.i.b16 %v2581_v26, %v2581_v26 }
  0x2b   :  { %2299 = vmatpush3.bf16.msra.mxu0 %v2444_v1  ;;  %v158_v18 = vunpack.c.l.s4 %v2579_v17  ;;  %v189_v21 = vunpack.c.l.s4 %v2580_v20  ;;  %v2658_v24 = vshrl.u32 %v160_v19, 7  ;;  %vm980_vm2 = vcmask 64512   ;;  %s2582_s9 = smov 16   ;;  %s2583_s10 = smov 24  }
  0x2c   :  { %2300 = vmatprep.subr.bf16.mxu0 %v2573_v0  ;;  %vm1463_vm4 = vcmask 1043456   ;;  %vm2127_vm5 = vcmask 130048   ;;  %vm2130_vm6 = vcmask 195584   ;;  %s2584_s13 = smov [#allocation8]  }
  0x2d   :  { %v159_v23 = vunpack.c.0.s8 %v158_v18  ;;  %v190_v30 = vunpack.c.0.s8 %v189_v21  ;;  %s2208_s14 = sshll.u32 %s2584_s13, 4  ;;  %s2209_s14 = int_to_ptr.vmem [resolvable:$true] %s2208_s14 }
  0x2e   :  { %s2540_s15 = scalar_lea.vmem %s2209_s14, 256  ;;  %p2545_p2 = scmp.lt.s32.totalorder %s2209_s14, %s2209_s14 }
  0x2f   :  { %2301 = vmatpush3.bf16.msra.mxu0 %v2445_v2  ;;  %v2665_v31 = vsub.s32 %v159_v23, %v2658_v24  ;;  %v2669_v40 = vsub.s32 %v190_v30, %v2658_v24  ;;  %p2541_p1 = scmp.ne.s32.totalorder %s2209_s14, %s2540_s15  ;;  %p2546_p3 = scmp.lt.s32.totalorder %s2540_s15, %s2540_s15 }
  0x30   :  { %2312 = vmatprep.subr.bf16.mxu0 %v2573_v0 }
  0x31   :  { %p2547_p4 = por %p2546_p3, %p2545_p2 }
  0x32   :  { %2303 = vmatmul.mubr.msk.bf16.vlgmr.msra.gmra.mxu0 %vm79_vm1, %v62_v5 }
  0x33   :  { %2314 = vmatprep.mubr.msk.bf16.mxu0 %vm2574_vm0, %v2573_v0  ;;  %p2548_p5 = pnand %p2547_p4, %p2541_p1 }
  0xf2   :  { %v117_v6 = vpop.f32.mrf.mxu0 }
  0xf3   :  { %v124_v9 = vmul.f32 0.35355338, %v117_v6 }
  0xf4   :  { %v2304_v7 = vpop.f32.mrf.mxu0 }
  0xf6   :  { %v120_v8 = vpop.f32.mrf.mxu0 }
  0xf7   :  { %v125_v10 = vmul.f32 0.35355338, %v120_v8  ;;  %v2637_v11 = vpack.c.bf16 %v120_v8, %v117_v6 }
  0xf8   :  { %v2305_v12 = vpop.f32.mrf.mxu0 }
  0xf9   :  { %v2639_v13 = vpack.c.bf16 %v125_v10, %v124_v9  ;;  %418 = vrot.lane.b32.xlu1 %v2637_v11, %s2575_s0  ;;  %414 = vrot.lane.b32.xlu0 %v2637_v11, %s2576_s2 }
  0xfb   :  { %v138_v1 = vshrl.u32 %v2639_v13, 16 }
  0xfd   :  { %420 = vrot.lane.b32.xlu1 %v2637_v11, %s2577_s7  ;;  %416 = vrot.lane.b32.xlu0 %v2637_v11, %s2578_s8 }
 0x16b   :  { %v2645_v14 = vpop.permute.xlu0 %414  ;;  %v2648_v15 = vpop.permute.xlu1 %418 }
 0x16c   :  { %422 = vrot.lane.b32.xlu0 %v2645_v14, %s2577_s7 }
 0x16f   :  { %v2650_v16 = vpop.permute.xlu0 %416  ;;  %v421_v22 = vpop.permute.xlu1 %420 }
 0x170   :  { %426 = vrot.lane.b32.xlu0 %v2648_v15, %s2577_s7  ;;  %424 = vrot.lane.b32.xlu1 %v2650_v16, %s2577_s7  ;;  %v432_v34 = vshrl.u32 %v421_v22, 16 }
 0x174   :  { %130 = vrot.lane.b32.xlu0 %v2639_v13, %s2578_s8  ;;  %128 = vrot.lane.b32.xlu1 %v2639_v13, %s2576_s2 }
 0x178   :  { %132 = vrot.lane.b32.xlu1 %v2639_v13, %s2575_s0 }
 0x1de   :  { %v423_v25 = vpop.permute.xlu0 %422 }
 0x1df   :  { %v430_v28 = vpack.i.b16 %v423_v25, %v421_v22  ;;  %v433_v29 = vshrl.u32 %v423_v25, 16 }
 0x1e1   :  { %v434_v38 = vpack.i.b16 %v433_v29, %v432_v34  ;;  %v444_v39 = vcombine.high %v430_v28, %v2662_v27  ;;  %v451_v41 = vrot.slane %v430_v28, %v2665_v31 }
 0x1e2   :  { %v425_v32 = vpop.permute.xlu1 %424  ;;  %v427_v33 = vpop.permute.xlu0 %426 }
 0x1e3   :  { %v440_v35 = vshrl.u32 %v425_v32, 16  ;;  %v438_v36 = vpack.i.b16 %v427_v33, %v425_v32  ;;  %v441_v37 = vshrl.u32 %v427_v33, 16  ;;  %v458_v49 = vrot.slane %v444_v39, %v2665_v31 }
 0x1e4   :  { %v517_v50 = vrot.slane %v434_v38, %v2665_v31  ;;  %v510_v61 = vcombine.high %v434_v38, %v2662_v27 }
 0x1e5   :  { %v442_v42 = vpack.i.b16 %v441_v37, %v440_v35  ;;  %v459_v43 = vcombine.high %v438_v36, %v2662_v27  ;;  %v466_v44 = vrot.slane %v438_v36, %v2665_v31 }
 0x1e6   :  { %v129_v45 = vpop.permute.xlu1 %128  ;;  %v131_v7 = vpop.permute.xlu0 %130  ;;  %v524_v12 = vrot.slane %v510_v61, %v2665_v31 }
 0x1e7   :  { %v473_v46 = vrot.slane %v459_v43, %v2665_v31  ;;  %v474_v47 = vcombine.low %v451_v41, %v466_v44  ;;  %v475_v48 = vcombine.high %v451_v41, %v466_v44  ;;  %v532_v51 = vrot.slane %v442_v42, %v2665_v31 }
 0x1e8   :  { %v136_v52 = vpack.i.b16 %v129_v45, %v2639_v13  ;;  %v525_v55 = vcombine.high %v442_v42, %v2662_v27  ;;  %v139_v56 = vshrl.u32 %v129_v45, 16  ;;  %v146_v21 = vshrl.u32 %v131_v7, 16 }
 0x1e9   :  { %v482_v53 = vrot.slane %v474_v47, %v2669_v40  ;;  %v489_v54 = vrot.slane %v475_v48, %v2669_v40  ;;  %v490_v57 = vcombine.low %v458_v49, %v473_v46  ;;  %v491_v58 = vcombine.high %v458_v49, %v473_v46 }
 0x1ea   :  { %v540_v59 = vcombine.low %v517_v50, %v532_v51  ;;  %v541_v60 = vcombine.high %v517_v50, %v532_v51  ;;  %v156_v2 = vcombine.high %v136_v52, %v2662_v27  ;;  %v133_v3 = vpop.permute.xlu1 %132  ;;  %v539_v4 = vrot.slane %v525_v55, %v2665_v31 }
 0x1eb   :  { %v576_v5 = vcombine.low %v482_v53, %v489_v54  ;;  %v2228_v6 = vcombine.high %v482_v53, %v489_v54  ;;  %v498_v8 = vrot.slane %v490_v57, %v2669_v40  ;;  %v505_v9 = vrot.slane %v491_v58, %v2669_v40 }
 0x1ec   :  { %v548_v62 = vrot.slane %v540_v59, %v2669_v40  ;;  %v555_v63 = vrot.slane %v541_v60, %v2669_v40  ;;  %v140_v10 = vpack.i.b16 %v139_v56, %v138_v1  ;;  %v144_v20 = vpack.i.b16 %v133_v3, %v131_v7 }
 0x1ed   :  { %v163_v13 = vrot.slane %v136_v52, %v2665_v31  ;;  %v2693_v22 = vrot.slane %v156_v2, %v2665_v31  ;;  %v147_v23 = vshrl.u32 %v133_v3, 16  ;;  %v556_v25 = vcombine.low %v524_v12, %v539_v4 }
 0x1ee   :  { %v601_v17 = vcombine.low %v548_v62, %v555_v63  ;;  %v2229_v18 = vcombine.high %v548_v62, %v555_v63  ;;  %v178_v28 = vrot.slane %v144_v20, %v2665_v31  ;;  %v583_v29 = vrot.slane %v576_v5, %v2665_v31 }
 0x1ef   :  { %v591_v30 = vrot.slane %v2228_v6, %v2665_v31  ;;  %v557_v32 = vcombine.high %v524_v12, %v539_v4  ;;  %v626_v33 = vcombine.low %v498_v8, %v505_v9  ;;  %v222_v34 = vcombine.high %v140_v10, %v2662_v27 }
 0x1f0   :  { %v148_v35 = vpack.i.b16 %v147_v23, %v146_v21  ;;  %v186_v36 = vcombine.low %v163_v13, %v178_v28  ;;  %v187_v37 = vcombine.high %v163_v13, %v178_v28  ;;  %v608_v38 = vrot.slane %v601_v17, %v2665_v31 }
 0x1f1   :  { %v616_v39 = vrot.slane %v2229_v18, %v2665_v31  ;;  %v229_v41 = vrot.slane %v140_v10, %v2665_v31  ;;  %v171_v42 = vcombine.high %v144_v20, %v2662_v27  ;;  %v2230_v45 = vcombine.high %v498_v8, %v505_v9 }
 0x1f2   :  { %v237_v43 = vcombine.high %v148_v35, %v2662_v27  ;;  %v244_v44 = vrot.slane %v148_v35, %v2665_v31  ;;  %v194_v46 = vrot.slane %v186_v36, %v2669_v40  ;;  %v201_v47 = vrot.slane %v187_v37, %v2669_v40 }
 0x1f3   :  { %v592_v48 = vcombine.low %v583_v29, %v591_v30  ;;  %v564_v49 = vrot.slane %v556_v25, %v2669_v40  ;;  %v571_v53 = vrot.slane %v557_v32, %v2669_v40  ;;  %v617_v56 = vcombine.low %v608_v38, %v616_v39 }
 0x1f4   :  { %v251_v50 = vrot.slane %v237_v43, %v2665_v31  ;;  %v252_v51 = vcombine.low %v229_v41, %v244_v44  ;;  %v253_v52 = vcombine.high %v229_v41, %v244_v44  ;;  %v288_v54 = vcombine.low %v194_v46, %v201_v47 }
 0x1f5   :  { %v2224_v55 = vcombine.high %v194_v46, %v201_v47  ;;  %v236_v57 = vrot.slane %v222_v34, %v2665_v31  ;;  %v185_v58 = vrot.slane %v171_v42, %v2665_v31  ;;  %v633_v61 = vrot.slane %v626_v33, %v2665_v31 }
 0x1f6   :  { %v260_v59 = vrot.slane %v252_v51, %v2669_v40  ;;  %v267_v60 = vrot.slane %v253_v52, %v2669_v40  ;;  %v295_v62 = vrot.slane %v288_v54, %v2665_v31  ;;  %v599_v1 = vrot.slane %v592_v48, %v2669_v40 }
 0x1f7   :  { %v303_v63 = vrot.slane %v2224_v55, %v2665_v31  ;;  %v268_v2 = vcombine.low %v236_v57, %v251_v50  ;;  %v269_v3 = vcombine.high %v236_v57, %v251_v50  ;;  %v641_v6 = vrot.slane %v2230_v45, %v2665_v31 }
 0x1f8   :  { %v313_v4 = vcombine.low %v260_v59, %v267_v60  ;;  %v2225_v5 = vcombine.high %v260_v59, %v267_v60  ;;  %v651_v7 = vcombine.low %v564_v49, %v571_v53  ;;  %v624_v9 = vrot.slane %v617_v56, %v2669_v40 }
 0x1f9   :  { %v304_v8 = vcombine.low %v295_v62, %v303_v63  ;;  %v202_v10 = vcombine.low %v2693_v22, %v185_v58  ;;  %v203_v12 = vcombine.high %v2693_v22, %v185_v58  ;;  %v2231_v20 = vcombine.high %v564_v49, %v571_v53 }
 0x1fa   :  { %v320_v17 = vrot.slane %v313_v4, %v2665_v31  ;;  %v328_v18 = vrot.slane %v2225_v5, %v2665_v31  ;;  %v678_v21 = vpack.i.b16 %v624_v9, %v599_v1  ;;  %v679_v13 = vshrl.u32 %v599_v1, 16 }
 0x1fb   :  { %v680_v23 = vshrl.u32 %v624_v9, 16  ;;  %v276_v25 = vrot.slane %v268_v2, %v2669_v40  ;;  %v283_v28 = vrot.slane %v269_v3, %v2669_v40  ;;  %v311_v29 = vrot.slane %v304_v8, %v2669_v40 }
 0x1fc   :  { %v329_v30 = vcombine.low %v320_v17, %v328_v18  ;;  %v985_v32 = vsel %vm980_vm2, %v678_v21, 0  ;;  %v600_v22 = vcombine.high %v599_v1, %v2581_v26  ;;  %v625_v34 = vcombine.high %v624_v9, %v2581_v26 }
 0x1fd   :  { %v681_v33 = vpack.i.b16 %v680_v23, %v679_v13  ;;  %v210_v35 = vrot.slane %v202_v10, %v2669_v40  ;;  %v217_v36 = vrot.slane %v203_v12, %v2669_v40  ;;  %2307 = vmatpush3.bf16.xpose.msra.mxu1 %v985_v32  ;;  %v658_v38 = vrot.slane %v651_v7, %v2665_v31 }
 0x1fe   :  { %v336_v37 = vrot.slane %v329_v30, %v2669_v40  ;;  %2318 = vmatprep.subr.bf16.mxu1 %v2573_v0  ;;  %v686_v41 = vshrl.u32 %v625_v34, 16  ;;  %v642_v42 = vcombine.low %v633_v61, %v641_v6  ;;  %v363_v43 = vcombine.low %v276_v25, %v283_v28 }
 0x1ff   :  { %v1031_v39 = vsel %vm980_vm2, %v681_v33, 0  ;;  %v2227_v44 = vcombine.high %v276_v25, %v283_v28  ;;  %v666_v46 = vrot.slane %v2231_v20, %v2665_v31  ;;  %v684_v48 = vpack.i.b16 %v625_v34, %v600_v22 }
 0x200   :  { %2313 = vmatpush3.bf16.xpose.msra.mxu0 %v1031_v39  ;;  %v392_v45 = vshrl.u32 %v336_v37, 16  ;;  %v390_v47 = vpack.i.b16 %v336_v37, %v311_v29  ;;  %v391_v49 = vshrl.u32 %v311_v29, 16  ;;  %v685_v50 = vshrl.u32 %v600_v22, 16 }
 0x201   :  { %2324 = vmatprep.subr.bf16.mxu0 %v2573_v0  ;;  %v338_v51 = vcombine.low %v210_v35, %v217_v36  ;;  %v2226_v52 = vcombine.high %v210_v35, %v217_v36  ;;  %v667_v53 = vcombine.low %v658_v38, %v666_v46  ;;  %v649_v56 = vrot.slane %v642_v42, %v2669_v40 }
 0x202   :  { %v393_v54 = vpack.i.b16 %v392_v45, %v391_v49  ;;  %v687_v55 = vpack.i.b16 %v686_v41, %v685_v50  ;;  %v370_v58 = vrot.slane %v363_v43, %v2665_v31  ;;  %v378_v59 = vrot.slane %v2227_v44, %v2665_v31 }
 0x203   :  { %v674_v57 = vrot.slane %v667_v53, %v2669_v40  ;;  %v1077_v60 = vsel %vm980_vm2, %v684_v48, 0  ;;  %v337_v61 = vcombine.high %v336_v37, %v2581_v26  ;;  %v345_v62 = vrot.slane %v338_v51, %v2665_v31 }
 0x204   :  { %2309 = vmatmul.mubr.msk.bf16.vlgmr.msra.gmra.mxu1 %vm980_vm2, %v390_v47  ;;  %v353_v63 = vrot.slane %v2226_v52, %v2665_v31  ;;  %v1123_v1 = vsel %vm980_vm2, %v687_v55, 0  ;;  %v312_v2 = vcombine.high %v311_v29, %v2581_v26  ;;  %v379_v4 = vcombine.low %v370_v58, %v378_v59 }
 0x205   :  { %2319 = vmatpush3.bf16.xpose.msra.mxu1 %v1077_v60  ;;  %2320 = vmatprep.mubr.msk.bf16.mxu1 %vm2574_vm0, %v2573_v0  ;;  %v692_v3 = vshrl.u32 %v674_v57, 16  ;;  %v690_v5 = vpack.i.b16 %v674_v57, %v649_v56  ;;  %v398_v6 = vshrl.u32 %v337_v61, 16  ;;  %v691_v7 = vshrl.u32 %v649_v56, 16 }
 0x206   :  { %2330 = vmatprep.subr.bf16.mxu1 %v2573_v0  ;;  %v354_v8 = vcombine.low %v345_v62, %v353_v63  ;;  %v396_v9 = vpack.i.b16 %v337_v61, %v312_v2  ;;  %v397_v10 = vshrl.u32 %v312_v2, 16  ;;  %v675_v17 = vcombine.high %v674_v57, %v2581_v26 }
 0x207   :  { %2315 = vmatmul.mubr.msk.bf16.vlgmr.msra.gmra.mxu0 %vm980_vm2, %v393_v54  ;;  %v693_v12 = vpack.i.b16 %v692_v3, %v691_v7  ;;  %v1169_v18 = vsel %vm980_vm2, %v690_v5, 0  ;;  %v386_v21 = vrot.slane %v379_v4, %v2669_v40  ;;  %v650_v13 = vcombine.high %v649_v56, %v2581_v26 }
 0x208   :  { %2325 = vmatpush3.bf16.xpose.msra.mxu0 %v1123_v1  ;;  %2326 = vmatprep.mubr.msk.bf16.mxu0 %vm2574_vm0, %v2573_v0  ;;  %v399_v20 = vpack.i.b16 %v398_v6, %v397_v10  ;;  %v361_v25 = vrot.slane %v354_v8, %v2669_v40  ;;  %v698_v28 = vshrl.u32 %v675_v17, 16  ;;  %v1352_v45 = vand.u32 127, %v160_v19 }
 0x209   :  { %2336 = vmatprep.subr.bf16.mxu0 %v2573_v0  ;;  %v1215_v23 = vsel %vm980_vm2, %v693_v12, 0  ;;  %v696_v29 = vpack.i.b16 %v675_v17, %v650_v13  ;;  %v404_v30 = vshrl.u32 %v386_v21, 16  ;;  %v697_v32 = vshrl.u32 %v650_v13, 16 }
 0x20a   :  { %v402_v33 = vpack.i.b16 %v386_v21, %v361_v25  ;;  %v403_v22 = vshrl.u32 %v361_v25, 16  ;;  %v387_v37 = vcombine.high %v386_v21, %v2581_v26  ;;  %v362_v39 = vcombine.high %v361_v25, %v2581_v26 }
 0x20b   :  { %v699_v34 = vpack.i.b16 %v698_v28, %v697_v32  ;;  %v1261_v35 = vsel %vm980_vm2, %v696_v29, 0  ;;  %vm2790_vm3 = vcmp.le.s32.totalorder %v1352_v45, %v2658_v24 }
 0x20c   :  { %2321 = vmatmul.mubr.msk.bf16.vlgmr.msra.gmra.mxu1 %vm980_vm2, %v396_v9  ;;  %v405_v36 = vpack.i.b16 %v404_v30, %v403_v22  ;;  %v410_v41 = vshrl.u32 %v387_v37, 16  ;;  %v408_v42 = vpack.i.b16 %v387_v37, %v362_v39  ;;  %v409_v43 = vshrl.u32 %v362_v39, 16 }
 0x20d   :  { %2331 = vmatpush3.bf16.xpose.msra.mxu1 %v1169_v18  ;;  %2332 = vmatprep.mubr.msk.bf16.mxu1 %vm2574_vm0, %v2573_v0  ;;  %v1307_v38 = vsel %vm980_vm2, %v699_v34, 0 }
 0x20e   :  { %2342 = vmatprep.subr.bf16.mxu1 %v2573_v0  ;;  %v411_v44 = vpack.i.b16 %v410_v41, %v409_v43 }
 0x20f   :  { %2327 = vmatmul.mubr.msk.bf16.vlgmr.msra.gmra.mxu0 %vm980_vm2, %v399_v20 }
 0x210   :  { %2337 = vmatpush3.bf16.xpose.msra.mxu0 %v1215_v23  ;;  %2338 = vmatprep.mubr.msk.bf16.mxu0 %vm2574_vm0, %v2573_v0 }
 0x211   :  { %2348 = vmatprep.subr.bf16.mxu0 %v2573_v0 }
 0x214   :  { %2333 = vmatmul.mubr.msk.bf16.vlgmr.msra.gmra.mxu1 %vm980_vm2, %v402_v33 }
 0x215   :  { %2343 = vmatpush3.bf16.xpose.msra.mxu1 %v1261_v35  ;;  %2344 = vmatprep.mubr.msk.bf16.mxu1 %vm2574_vm0, %v2573_v0 }
 0x216   :  { %2354 = vmatprep.subr.bf16.mxu1 %v2573_v0 }
 0x217   :  { %2339 = vmatmul.mubr.msk.bf16.vlgmr.msra.gmra.mxu0 %vm980_vm2, %v405_v36 }
 0x218   :  { %2349 = vmatpush3.bf16.xpose.msra.mxu0 %v1307_v38  ;;  %2350 = vmatprep.mubr.msk.bf16.mxu0 %vm2574_vm0, %v2573_v0 }
 0x219   :  { %2360 = vmatprep.subr.bf16.mxu0 %v2573_v0 }
 0x21c   :  { %2345 = vmatmul.mubr.msk.bf16.vlgmr.msra.gmra.mxu1 %vm980_vm2, %v408_v42 }
 0x21d   :  { %2356 = vmatprep.mubr.msk.bf16.mxu1 %vm2574_vm0, %v2573_v0 }
 0x21f   :  { %2351 = vmatmul.mubr.msk.bf16.vlgmr.msra.gmra.mxu0 %vm980_vm2, %v411_v44 }
 0x220   :  { %2362 = vmatprep.mubr.msk.bf16.mxu0 %vm2574_vm0, %v2573_v0 }
 0x2c4   :  { %v1021_v47 = vpop.f32.mrf.mxu1 }
 0x2c5   :  { %v1356_v48 = vsel %vm2790_vm3, %v1021_v47, -1e+30 }
 0x2c6   :  { %v2310_v49 = vpop.f32.mrf.mxu1  ;;  %v1364_v51 = vsel %vm980_vm2, %v1356_v48, -inf }
 0x2c7   :  { %v1067_v50 = vpop.f32.mrf.mxu0  ;;  %1365 = vmax.xlane.f32.xlu0 %v1364_v51 }
 0x2c8   :  { %v1357_v52 = vsel %vm2790_vm3, %v1067_v50, -1e+30  ;;  %v1024_v53 = vpop.f32.mrf.mxu1 }
 0x2c9   :  { %v2316_v54 = vpop.f32.mrf.mxu0  ;;  %v1367_v19 = vsel %vm980_vm2, %v1357_v52, -inf }
 0x2ca   :  { %1368 = vmax.xlane.f32.xlu1 %v1367_v19  ;;  %v2311_v24 = vpop.f32.mrf.mxu1 }
 0x2cb   :  { %v1070_v55 = vpop.f32.mrf.mxu0 }
 0x2cc   :  { %v1113_v57 = vpop.f32.mrf.mxu1 }
 0x2cd   :  { %v2317_v56 = vpop.f32.mrf.mxu0  ;;  %v2802_v58 = vsel %vm2790_vm3, %v1113_v57, -1e+30 }
 0x2ce   :  { %v2322_v59 = vpop.f32.mrf.mxu1  ;;  %v1370_v61 = vsel %vm980_vm2, %v2802_v58, -inf }
 0x2cf   :  { %v1159_v60 = vpop.f32.mrf.mxu0  ;;  %1371 = vmax.xlane.f32.xlu0 %v1370_v61 }
 0x2d0   :  { %v2808_v62 = vsel %vm2790_vm3, %v1159_v60, -1e+30  ;;  %v1116_v63 = vpop.f32.mrf.mxu1 }
 0x2d1   :  { %v2328_v1 = vpop.f32.mrf.mxu0  ;;  %v1373_v4 = vsel %vm980_vm2, %v2808_v62, -inf }
 0x2d2   :  { %v2323_v2 = vpop.f32.mrf.mxu1 }
 0x2d3   :  { %v1162_v3 = vpop.f32.mrf.mxu0  ;;  %1374 = vmax.xlane.f32.xlu0 %v1373_v4 }
 0x2d4   :  { %v1205_v6 = vpop.f32.mrf.mxu1 }
 0x2d5   :  { %v2329_v5 = vpop.f32.mrf.mxu0  ;;  %v1360_v7 = vsel %vm2790_vm3, %v1205_v6, -1e+30 }
 0x2d6   :  { %v2334_v8 = vpop.f32.mrf.mxu1  ;;  %v1376_v10 = vsel %vm980_vm2, %v1360_v7, -inf }
 0x2d7   :  { %v1251_v9 = vpop.f32.mrf.mxu0  ;;  %1377 = vmax.xlane.f32.xlu1 %v1376_v10 }
 0x2d8   :  { %v1361_v12 = vsel %vm2790_vm3, %v1251_v9, -1e+30  ;;  %v1208_v17 = vpop.f32.mrf.mxu1 }
 0x2d9   :  { %v2340_v18 = vpop.f32.mrf.mxu0  ;;  %v1379_v20 = vsel %vm980_vm2, %v1361_v12, -inf }
 0x2da   :  { %1380 = vmax.xlane.f32.xlu0 %v1379_v20  ;;  %v2335_v21 = vpop.f32.mrf.mxu1 }
 0x2db   :  { %v1254_v13 = vpop.f32.mrf.mxu0 }
 0x2dc   :  { %v1297_v25 = vpop.f32.mrf.mxu1 }
 0x2dd   :  { %v2341_v23 = vpop.f32.mrf.mxu0  ;;  %v1362_v28 = vsel %vm2790_vm3, %v1297_v25, -1e+30 }
 0x2de   :  { %v2346_v29 = vpop.f32.mrf.mxu1  ;;  %v1382_v32 = vsel %vm980_vm2, %v1362_v28, -inf }
 0x2df   :  { %v1343_v30 = vpop.f32.mrf.mxu0  ;;  %1383 = vmax.xlane.f32.xlu1 %v1382_v32 }
 0x2e0   :  { %v1363_v33 = vsel %vm2790_vm3, %v1343_v30, -1e+30  ;;  %v1300_v22 = vpop.f32.mrf.mxu1 }
 0x2e1   :  { %v2352_v34 = vpop.f32.mrf.mxu0  ;;  %v1385_v35 = vsel %vm980_vm2, %v1363_v33, -inf }
 0x2e2   :  { %1386 = vmax.xlane.f32.xlu0 %v1385_v35  ;;  %v2347_v36 = vpop.f32.mrf.mxu1 }
 0x2e3   :  { %v1346_v37 = vpop.f32.mrf.mxu0 }
 0x2e5   :  { %v2353_v38 = vpop.f32.mrf.mxu0 }
 0x2f0   :  { %700 = vrot.lane.b32.xlu1 %v2637_v11, %s2567_s18 }
 0x350   :  { %v1366_v39 = vpop.xlane.xlu0 %1365 }
 0x351   :  { %v1388_v41 = vsub.f32 %v1356_v48, %v1366_v39 }
 0x353   :  { %v1369_v42 = vpop.xlane.xlu1 %1368  ;;  %v1396_v43 = vmul.f32 1.442695, %v1388_v41 }
 0x354   :  { %v1389_v44 = vsub.f32 %v1357_v52, %v1369_v42 }
 0x355   :  { %2448 = vpow2.f32 %v1396_v43 }
 0x356   :  { %v1398_v45 = vmul.f32 1.442695, %v1389_v44 }
 0x358   :  { %2450 = vpow2.f32 %v1398_v45  ;;  %v1372_v11 = vpop.xlane.xlu0 %1371 }
 0x359   :  { %v1390_v52 = vsub.f32 %v2802_v58, %v1372_v11 }
 0x35b   :  { %v1400_v19 = vmul.f32 1.442695, %v1390_v52 }
 0x35c   :  { %v1375_v48 = vpop.xlane.xlu0 %1374 }
 0x35d   :  { %v1391_v53 = vsub.f32 %v2808_v62, %v1375_v48  ;;  %2452 = vpow2.f32 %v1400_v19 }
 0x35f   :  { %v1402_v56 = vmul.f32 1.442695, %v1391_v53 }
 0x360   :  { %v1378_v51 = vpop.xlane.xlu1 %1377 }
 0x361   :  { %v1392_v24 = vsub.f32 %v1360_v7, %v1378_v51  ;;  %2454 = vpow2.f32 %v1402_v56 }
 0x362   :  { %v2826_v46 = vpop.eup %2448 }
 0x363   :  { %v1412_v47 = vsel %vm980_vm2, %v2826_v46, 0.0  ;;  %v1381_v55 = vpop.xlane.xlu0 %1380 }
 0x364   :  { %1413 = vadd.xlane.f32.xlu1 %v1412_v47  ;;  %v1393_v59 = vsub.f32 %v1361_v12, %v1381_v55 }
 0x365   :  { %v2830_v49 = vpop.eup %2450 }
 0x366   :  { %v1415_v50 = vsel %vm980_vm2, %v2830_v49, 0.0 }
 0x367   :  { %1416 = vadd.xlane.f32.xlu0 %v1415_v50 }
 0x368   :  { %v1384_v54 = vpop.xlane.xlu1 %1383 }
 0x369   :  { %v1394_v57 = vsub.f32 %v1362_v28, %v1384_v54 }
 0x36a   :  { %v2842_v62 = vpop.eup %2452 }
 0x36b   :  { %v1408_v60 = vmul.f32 1.442695, %v1394_v57  ;;  %v1418_v1 = vsel %vm980_vm2, %v2842_v62, 0.0 }
 0x36c   :  { %v701_v12 = vpop.permute.xlu1 %700 }
 0x36d   :  { %v712_v23 = vshrl.u32 %v701_v12, 16 }
 0x36e   :  { %v2844_v63 = vpop.eup %2454 }
 0x36f   :  { %v1421_v3 = vsel %vm980_vm2, %v2844_v63, 0.0 }
 0x375   :  { %704 = vrot.lane.b32.xlu1 %v2650_v16, %s2567_s18  ;;  %v1404_v16 = vmul.f32 1.442695, %v1392_v24 }
 0x377   :  { %2456 = vpow2.f32 %v1404_v16 }
 0x378   :  { %2458 = vpow2.f32 %v1408_v60 }
 0x379   :  { %706 = vrot.lane.b32.xlu1 %v2648_v15, %s2567_s18  ;;  %v1387_v15 = vpop.xlane.xlu0 %1386 }
 0x37a   :  { %v1395_v61 = vsub.f32 %v1363_v33, %v1387_v15 }
 0x37c   :  { %v1410_v58 = vmul.f32 1.442695, %v1395_v61 }
 0x37d   :  { %702 = vrot.lane.b32.xlu0 %v2645_v14, %s2567_s18  ;;  %v1406_v14 = vmul.f32 1.442695, %v1393_v59 }
 0x37f   :  { %2460 = vpow2.f32 %v1406_v14 }
 0x380   :  { %2462 = vpow2.f32 %v1410_v58 }
 0x384   :  { %v2848_v2 = vpop.eup %2456 }
 0x385   :  { %v2852_v4 = vpop.eup %2458  ;;  %v1424_v5 = vsel %vm980_vm2, %v2848_v2, 0.0 }
 0x386   :  { %v1430_v7 = vsel %vm980_vm2, %v2852_v4, 0.0 }
 0x38c   :  { %v2856_v6 = vpop.eup %2460 }
 0x38d   :  { %v1427_v8 = vsel %vm980_vm2, %v2856_v6, 0.0  ;;  %v2862_v9 = vpop.eup %2462 }
 0x38e   :  { %v1433_v10 = vsel %vm980_vm2, %v2862_v9, 0.0 }
 0x39c   :  { %1419 = vadd.xlane.f32.xlu0 %v1418_v1 }
 0x39d   :  { %1422 = vadd.xlane.f32.xlu1 %v1421_v3 }
 0x3a0   :  { %1425 = vadd.xlane.f32.xlu0 %v1424_v5 }
 0x3a1   :  { %1431 = vadd.xlane.f32.xlu1 %v1430_v7 }
 0x3a4   :  { %1428 = vadd.xlane.f32.xlu0 %v1427_v8 }
 0x3a8   :  { %1434 = vadd.xlane.f32.xlu0 %v1433_v10 }
 0x3ed   :  { %v1414_v17 = vpop.xlane.xlu1 %1413 }
 0x3ee   :  { %2464 = vrcp.f32 %v1414_v17 }
 0x3f0   :  { %v1417_v18 = vpop.xlane.xlu0 %1416 }
 0x3f1   :  { %v705_v20 = vpop.permute.xlu1 %704  ;;  %2466 = vrcp.f32 %v1417_v18 }
 0x3f2   :  { %v720_v30 = vshrl.u32 %v705_v20, 16 }
 0x3f4   :  { %v703_v21 = vpop.permute.xlu0 %702 }
 0x3f5   :  { %v713_v13 = vshrl.u32 %v703_v21, 16  ;;  %v2866_v25 = vpack.i.b16 %v703_v21, %v701_v12  ;;  %v707_v28 = vpop.permute.xlu1 %706 }
 0x3f6   :  { %v2868_v29 = vpack.i.b16 %v707_v28, %v705_v20  ;;  %v721_v33 = vshrl.u32 %v707_v28, 16 }
 0x3f7   :  { %v2870_v32 = vpack.i.b16 %v713_v13, %v712_v23  ;;  %v731_v22 = vrot.slane %v2866_v25, %v2665_v31 }
 0x3f8   :  { %v2874_v34 = vpack.i.b16 %v721_v33, %v720_v30  ;;  %v746_v35 = vrot.slane %v2868_v29, %v2665_v31  ;;  %v739_v28 = vcombine.high %v2868_v29, %v2662_v27  ;;  %v724_v30 = vcombine.high %v2866_v25, %v2662_v27 }
 0x3f9   :  { %v797_v36 = vrot.slane %v2870_v32, %v2665_v31  ;;  %v790_v23 = vcombine.high %v2870_v32, %v2662_v27 }
 0x3fa   :  { %v754_v37 = vcombine.low %v731_v22, %v746_v35  ;;  %v755_v38 = vcombine.high %v731_v22, %v746_v35  ;;  %v812_v39 = vrot.slane %v2874_v34, %v2665_v31  ;;  %v738_v32 = vrot.slane %v724_v30, %v2665_v31 }
 0x3fb   :  { %v2465_v55 = vpop.eup %2464  ;;  %v804_v22 = vrot.slane %v790_v23, %v2665_v31 }
 0x3fc   :  { %v762_v41 = vrot.slane %v754_v37, %v2669_v40  ;;  %v769_v42 = vrot.slane %v755_v38, %v2669_v40  ;;  %v820_v43 = vcombine.low %v797_v36, %v812_v39  ;;  %v821_v44 = vcombine.high %v797_v36, %v812_v39 }
 0x3fd   :  { %v1444_v60 = vmul.f32 %v2465_v55, %v2826_v46 }
 0x3fe   :  { %v828_v45 = vrot.slane %v820_v43, %v2669_v40  ;;  %v856_v47 = vcombine.low %v762_v41, %v769_v42  ;;  %v835_v50 = vrot.slane %v821_v44, %v2669_v40  ;;  %v2232_v11 = vcombine.high %v762_v41, %v769_v42  ;;  %v2467_v16 = vpop.eup %2466 }
 0x3ff   :  { %v1445_v3 = vmul.f32 %v2467_v16, %v2830_v49  ;;  %v1452_v18 = vpack.c.bf16 %v1444_v60, %v1444_v60  ;;  %v805_v49 = vcombine.high %v2874_v34, %v2662_v27  ;;  %v753_v34 = vrot.slane %v739_v28, %v2665_v31 }
 0x400   :  { %v863_v48 = vrot.slane %v856_v47, %v2665_v31  ;;  %v871_v51 = vrot.slane %v2232_v11, %v2665_v31  ;;  %v881_v52 = vcombine.low %v828_v45, %v835_v50  ;;  %v2233_v53 = vcombine.high %v828_v45, %v835_v50 }
 0x401   :  { %v1453_v21 = vpack.c.bf16 %v1445_v3, %v1445_v3  ;;  %v819_v33 = vrot.slane %v805_v49, %v2665_v31  ;;  %v770_v29 = vcombine.low %v738_v32, %v753_v34  ;;  %v771_v37 = vcombine.high %v738_v32, %v753_v34 }
 0x402   :  { %v888_v54 = vrot.slane %v881_v52, %v2665_v31  ;;  %v896_v19 = vrot.slane %v2233_v53, %v2665_v31  ;;  %v872_v24 = vcombine.low %v863_v48, %v871_v51 }
 0x403   :  { %v836_v35 = vcombine.low %v804_v22, %v819_v33  ;;  %v837_v36 = vcombine.high %v804_v22, %v819_v33  ;;  %v778_v41 = vrot.slane %v770_v29, %v2669_v40  ;;  %v785_v27 = vrot.slane %v771_v37, %v2669_v40 }
 0x404   :  { %v879_v56 = vrot.slane %v872_v24, %v2669_v40  ;;  %v897_v57 = vcombine.low %v888_v54, %v896_v19 }
 0x405   :  { %v844_v38 = vrot.slane %v836_v35, %v2669_v40  ;;  %v851_v39 = vrot.slane %v837_v36, %v2669_v40  ;;  %v906_v43 = vcombine.low %v778_v41, %v785_v27  ;;  %v2234_v44 = vcombine.high %v778_v41, %v785_v27 }
 0x406   :  { %v904_v59 = vrot.slane %v897_v57, %v2669_v40  ;;  %v880_v15 = vcombine.high %v879_v56, %v2581_v26  ;;  %v959_v61 = vshrl.u32 %v879_v56, 16 }
 0x407   :  { %v931_v25 = vcombine.low %v844_v38, %v851_v39  ;;  %v2235_v42 = vcombine.high %v844_v38, %v851_v39  ;;  %v913_v48 = vrot.slane %v906_v43, %v2665_v31  ;;  %v921_v51 = vrot.slane %v2234_v44, %v2665_v31 }
 0x408   :  { %v958_v14 = vpack.i.b16 %v904_v59, %v879_v56  ;;  %v960_v58 = vshrl.u32 %v904_v59, 16  ;;  %v905_v1 = vcombine.high %v904_v59, %v2581_v26  ;;  %v965_v5 = vshrl.u32 %v880_v15, 16 }
 0x409   :  { %v938_v47 = vrot.slane %v931_v25, %v2665_v31  ;;  %v946_v50 = vrot.slane %v2235_v42, %v2665_v31  ;;  %v922_v54 = vcombine.low %v913_v48, %v921_v51 }
 0x40a   :  { %v1465_v7 = vsel %vm1463_vm4, %v958_v14, 0  ;;  %v961_v8 = vpack.i.b16 %v960_v58, %v959_v61  ;;  %v964_v10 = vpack.i.b16 %v905_v1, %v880_v15  ;;  %v966_v12 = vshrl.u32 %v905_v1, 16 }
 0x40b   :  { %2355 = vmatpush3.bf16.msra.mxu1 %v1465_v7  ;;  %v947_v53 = vcombine.low %v938_v47, %v946_v50  ;;  %v929_v56 = vrot.slane %v922_v54, %v2669_v40 }
 0x40c   :  { %v1511_v17 = vsel %vm1463_vm4, %v961_v8, 0  ;;  %2366 = vmatprep.subr.bf16.mxu1 %v2573_v0  ;;  %v967_v46 = vpack.i.b16 %v966_v12, %v965_v5  ;;  %v1557_v20 = vsel %vm1463_vm4, %v964_v10, 0 }
 0x40d   :  { %2361 = vmatpush3.bf16.msra.mxu0 %v1511_v17  ;;  %v954_v24 = vrot.slane %v947_v53, %v2669_v40  ;;  %v971_v14 = vshrl.u32 %v929_v56, 16  ;;  %v930_v12 = vcombine.high %v929_v56, %v2581_v26 }
 0x40e   :  { %2357 = vmatmul.mubr.msk.bf16.vlgmr.msra.gmra.mxu1 %vm980_vm2, %v1452_v18  ;;  %2372 = vmatprep.subr.bf16.mxu0 %v2573_v0  ;;  %v1603_v13 = vsel %vm1463_vm4, %v967_v46, 0 }
 0x40f   :  { %2367 = vmatpush3.bf16.msra.mxu1 %v1557_v20  ;;  %2368 = vmatprep.mubr.msk.bf16.mxu1 %vm2574_vm0, %v2573_v0  ;;  %v972_v16 = vshrl.u32 %v954_v24, 16  ;;  %v970_v60 = vpack.i.b16 %v954_v24, %v929_v56  ;;  %v955_v5 = vcombine.high %v954_v24, %v2581_v26  ;;  %v977_v20 = vshrl.u32 %v930_v12, 16 }
 0x410   :  { %2363 = vmatmul.mubr.msk.bf16.vlgmr.msra.gmra.mxu0 %vm980_vm2, %v1453_v21  ;;  %2378 = vmatprep.subr.bf16.mxu1 %v2573_v0 }
 0x411   :  { %2373 = vmatpush3.bf16.msra.mxu0 %v1603_v13  ;;  %2374 = vmatprep.mubr.msk.bf16.mxu0 %vm2574_vm0, %v2573_v0  ;;  %v973_v3 = vpack.i.b16 %v972_v16, %v971_v14  ;;  %v1649_v8 = vsel %vm1463_vm4, %v970_v60, 0  ;;  %v978_v17 = vshrl.u32 %v955_v5, 16  ;;  %v976_v46 = vpack.i.b16 %v955_v5, %v930_v12 }
 0x412   :  { %2384 = vmatprep.subr.bf16.mxu0 %v2573_v0 }
 0x413   :  { %v979_v49 = vpack.i.b16 %v978_v17, %v977_v20  ;;  %v1741_v23 = vsel %vm1463_vm4, %v976_v46, 0 }
 0x415   :  { %v1787_v30 = vsel %vm1463_vm4, %v979_v49, 0 }
 0x425   :  { %v1420_v45 = vpop.xlane.xlu0 %1419 }
 0x426   :  { %2468 = vrcp.f32 %v1420_v45  ;;  %v1423_v11 = vpop.xlane.xlu1 %1422 }
 0x427   :  { %2470 = vrcp.f32 %v1423_v11 }
 0x429   :  { %v1426_v52 = vpop.xlane.xlu0 %1425 }
 0x42a   :  { %2472 = vrcp.f32 %v1426_v52  ;;  %v1432_v55 = vpop.xlane.xlu1 %1431 }
 0x42d   :  { %v1429_v19 = vpop.xlane.xlu0 %1428 }
 0x42e   :  { %2474 = vrcp.f32 %v1429_v19 }
 0x42f   :  { %2476 = vrcp.f32 %v1432_v55 }
 0x431   :  { %v1435_v57 = vpop.xlane.xlu0 %1434 }
 0x432   :  { %2478 = vrcp.f32 %v1435_v57 }
 0x433   :  { %v2469_v59 = vpop.eup %2468 }
 0x434   :  { %v1446_v15 = vmul.f32 %v2469_v59, %v2842_v62  ;;  %v2471_v61 = vpop.eup %2470  ;;  %v1695_v62 = vsel %vm1463_vm4, %v973_v3, 0 }
 0x435   :  { %v1447_v1 = vmul.f32 %v2471_v61, %v2844_v63 }
 0x436   :  { %v1454_v58 = vpack.c.bf16 %v1446_v15, %v1446_v15 }
 0x437   :  { %v2473_v7 = vpop.eup %2472  ;;  %v1455_v10 = vpack.c.bf16 %v1447_v1, %v1447_v1 }
 0x438   :  { %2369 = vmatmul.mubr.msk.bf16.vlgmr.msra.gmra.mxu1 %vm980_vm2, %v1454_v58  ;;  %v1448_v63 = vmul.f32 %v2473_v7, %v2848_v2 }
 0x439   :  { %2379 = vmatpush3.bf16.msra.mxu1 %v1649_v8  ;;  %2380 = vmatprep.mubr.msk.bf16.mxu1 %vm2574_vm0, %v2573_v0 }
 0x43a   :  { %2375 = vmatmul.mubr.msk.bf16.vlgmr.msra.gmra.mxu0 %vm980_vm2, %v1455_v10  ;;  %2390 = vmatprep.subr.bf16.mxu1 %v2573_v0  ;;  %v1456_v21 = vpack.c.bf16 %v1448_v63, %v1448_v63 }
 0x43b   :  { %v2475_v18 = vpop.eup %2474  ;;  %2385 = vmatpush3.bf16.msra.mxu0 %v1695_v62  ;;  %2386 = vmatprep.mubr.msk.bf16.mxu0 %vm2574_vm0, %v2573_v0 }
 0x43c   :  { %2396 = vmatprep.subr.bf16.mxu0 %v2573_v0  ;;  %v1449_v26 = vmul.f32 %v2475_v18, %v2856_v6  ;;  %v2477_v13 = vpop.eup %2476 }
 0x43d   :  { %v1450_v6 = vmul.f32 %v2477_v13, %v2852_v4 }
 0x43e   :  { %v1457_v2 = vpack.c.bf16 %v1449_v26, %v1449_v26 }
 0x43f   :  { %v2479_v28 = vpop.eup %2478  ;;  %v1458_v22 = vpack.c.bf16 %v1450_v6, %v1450_v6 }
 0x440   :  { %2381 = vmatmul.mubr.msk.bf16.vlgmr.msra.gmra.mxu1 %vm980_vm2, %v1456_v21  ;;  %v1451_v33 = vmul.f32 %v2479_v28, %v2862_v9 }
 0x441   :  { %2391 = vmatpush3.bf16.msra.mxu1 %v1741_v23  ;;  %2392 = vmatprep.mubr.msk.bf16.mxu1 %vm2574_vm0, %v2573_v0 }
 0x442   :  { %2387 = vmatmul.mubr.msk.bf16.vlgmr.msra.gmra.mxu0 %vm980_vm2, %v1457_v2  ;;  %2402 = vmatprep.subr.bf16.mxu1 %v2573_v0  ;;  %v1459_v34 = vpack.c.bf16 %v1451_v33, %v1451_v33 }
 0x443   :  { %2397 = vmatpush3.bf16.msra.mxu0 %v1787_v30  ;;  %2398 = vmatprep.mubr.msk.bf16.mxu0 %vm2574_vm0, %v2573_v0 }
 0x448   :  { %2393 = vmatmul.mubr.msk.bf16.vlgmr.msra.gmra.mxu1 %vm980_vm2, %v1458_v22 }
 0x449   :  { %2406 = vmatprep.mubr.msk.bf16.mxu1 %vm2574_vm0, %v2573_v0 }
 0x44a   :  { %2399 = vmatmul.mubr.msk.bf16.vlgmr.msra.gmra.mxu0 %vm980_vm2, %v1459_v34 }
 0x4ce   :  { %v1501_v32 = vpop.f32.mrf.mxu1 }
 0x4d0   :  { %v2358_v35 = vpop.f32.mrf.mxu1  ;;  %v1547_v4 = vpop.f32.mrf.mxu0 }
 0x4d2   :  { %v1504_v36 = vpop.f32.mrf.mxu1  ;;  %v2364_v29 = vpop.f32.mrf.mxu0 }
 0x4d4   :  { %v2359_v37 = vpop.f32.mrf.mxu1  ;;  %v1550_v38 = vpop.f32.mrf.mxu0 }
 0x4d6   :  { %v2365_v39 = vpop.f32.mrf.mxu0 }
 0x4f8   :  { %v1593_v41 = vpop.f32.mrf.mxu1 }
 0x4f9   :  { %v1829_v27 = vcombine.low %v1501_v32, %v1593_v41  ;;  %v1830_v9 = vcombine.high %v1501_v32, %v1593_v41 }
 0x4fa   :  { %v2370_v25 = vpop.f32.mrf.mxu1  ;;  %v1639_v42 = vpop.f32.mrf.mxu0 }
 0x4fb   :  { %v1845_v43 = vcombine.low %v1547_v4, %v1639_v42  ;;  %v1846_v44 = vcombine.high %v1547_v4, %v1639_v42  ;;  %v1837_v50 = vrot.slane %v1829_v27, %v2665_v31  ;;  %v1844_v11 = vrot.slane %v1830_v9, %v2665_v31 }
 0x4fc   :  { %v1596_v45 = vpop.f32.mrf.mxu1  ;;  %v2376_v47 = vpop.f32.mrf.mxu0 }
 0x4fd   :  { %v1853_v48 = vrot.slane %v1845_v43, %v2665_v31  ;;  %v1860_v51 = vrot.slane %v1846_v44, %v2665_v31 }
 0x4fe   :  { %v2371_v52 = vpop.f32.mrf.mxu1  ;;  %v1642_v53 = vpop.f32.mrf.mxu0 }
 0x4ff   :  { %v1861_v54 = vcombine.low %v1837_v50, %v1853_v48  ;;  %v1862_v19 = vcombine.high %v1837_v50, %v1853_v48  ;;  %v1877_v24 = vcombine.low %v1844_v11, %v1860_v51  ;;  %v1878_v55 = vcombine.high %v1844_v11, %v1860_v51  ;;  %v2446_v53 = vld [vmem:[#allocation7 + $0x8] sm:$0xff]  }
 0x500   :  { %v2377_v56 = vpop.f32.mrf.mxu0  ;;  %v1685_v57 = vpop.f32.mrf.mxu1  ;;  %2403 = vmatpush3.bf16.msra.mxu1 %v2446_v53 }
 0x501   :  { %v1869_v16 = vrot.slane %v1861_v54, %v2669_v40  ;;  %v1876_v59 = vrot.slane %v1862_v19, %v2669_v40  ;;  %v1885_v15 = vrot.slane %v1877_v24, %v2669_v40  ;;  %v1892_v60 = vrot.slane %v1878_v55, %v2669_v40  ;;  %2404 = vmatprep.subr.bf16.mxu1 %v2573_v0 }
 0x502   :  { %v2382_v14 = vpop.f32.mrf.mxu1  ;;  %v1731_v61 = vpop.f32.mrf.mxu0 }
 0x503   :  { %v1965_v58 = vcombine.low %v1869_v16, %v1876_v59  ;;  %v2252_v1 = vcombine.high %v1869_v16, %v1876_v59  ;;  %v1981_v3 = vcombine.low %v1885_v15, %v1892_v60  ;;  %v2253_v5 = vcombine.high %v1885_v15, %v1892_v60 }
 0x504   :  { %v1688_v7 = vpop.f32.mrf.mxu1  ;;  %v2388_v8 = vpop.f32.mrf.mxu0 }
 0x505   :  { %v1972_v10 = vrot.slane %v1965_v58, %v2665_v31  ;;  %v1980_v12 = vrot.slane %v2252_v1, %v2665_v31  ;;  %v1988_v62 = vrot.slane %v1981_v3, %v2665_v31  ;;  %v1996_v63 = vrot.slane %v2253_v5, %v2665_v31 }
 0x506   :  { %v2383_v17 = vpop.f32.mrf.mxu1  ;;  %v1734_v18 = vpop.f32.mrf.mxu0 }
 0x507   :  { %v1997_v46 = vcombine.low %v1972_v10, %v1980_v12  ;;  %v2013_v26 = vcombine.low %v1988_v62, %v1996_v63  ;;  %v1998_v47 = vcombine.high %v1972_v10, %v1980_v12  ;;  %v2014_v50 = vcombine.high %v1988_v62, %v1996_v63 }
 0x508   :  { %v2389_v20 = vpop.f32.mrf.mxu0  ;;  %v1777_v21 = vpop.f32.mrf.mxu1 }
 0x509   :  { %v1897_v49 = vcombine.low %v1685_v57, %v1777_v21  ;;  %v1898_v13 = vcombine.high %v1685_v57, %v1777_v21  ;;  %v2976_v28 = vrot.slane %v1997_v46, %v2669_v40  ;;  %v2979_v30 = vrot.slane %v2013_v26, %v2669_v40 }
 0x50a   :  { %v2394_v23 = vpop.f32.mrf.mxu1  ;;  %v1823_v2 = vpop.f32.mrf.mxu0  ;;  %v2012_v56 = vrot.slane %v1998_v47, %v2669_v40  ;;  %v2028_v57 = vrot.slane %v2014_v50, %v2669_v40 }
 0x50b   :  { %v1913_v6 = vcombine.low %v1731_v61, %v1823_v2  ;;  %v1914_v33 = vcombine.high %v1731_v61, %v1823_v2  ;;  %v2029_v32 = vcombine.low %v2976_v28, %v2979_v30  ;;  %v1905_v35 = vrot.slane %v1897_v49, %v2665_v31 }
 0x50c   :  { %v1780_v22 = vpop.f32.mrf.mxu1  ;;  %v2400_v34 = vpop.f32.mrf.mxu0  ;;  %v1912_v4 = vrot.slane %v1898_v13, %v2665_v31  ;;  %v2031_v3 = vcombine.low %v2012_v56, %v2028_v57  ;;  %v2030_v7 = vcombine.high %v2976_v28, %v2979_v30  ;;  %v2032_v63 = vcombine.high %v2012_v56, %v2028_v57  ;;  %v2256_v28 = vld [vmem:[%s3025_s3] ss:$0 sm:$0xff] }
 0x50d   :  { %v1921_v36 = vrot.slane %v1913_v6, %v2665_v31  ;;  %v1928_v29 = vrot.slane %v1914_v33, %v2665_v31 }
 0x50e   :  { %v2395_v37 = vpop.f32.mrf.mxu1  ;;  %v1826_v38 = vpop.f32.mrf.mxu0 }
 0x50f   :  { %v1929_v39 = vcombine.low %v1905_v35, %v1921_v36  ;;  %v1930_v41 = vcombine.high %v1905_v35, %v1921_v36  ;;  %v1945_v27 = vcombine.low %v1912_v4, %v1928_v29  ;;  %v1946_v9 = vcombine.high %v1912_v4, %v1928_v29 }
 0x510   :  { %v2401_v25 = vpop.f32.mrf.mxu0 }
 0x511   :  { %v1937_v42 = vrot.slane %v1929_v39, %v2669_v40  ;;  %v1944_v43 = vrot.slane %v1930_v41, %v2669_v40  ;;  %v1953_v44 = vrot.slane %v1945_v27, %v2669_v40  ;;  %v1960_v45 = vrot.slane %v1946_v9, %v2669_v40 }
 0x513   :  { %v2033_v11 = vcombine.low %v1937_v42, %v1944_v43  ;;  %v2254_v48 = vcombine.high %v1937_v42, %v1944_v43  ;;  %v2049_v51 = vcombine.low %v1953_v44, %v1960_v45  ;;  %v2255_v52 = vcombine.high %v1953_v44, %v1960_v45 }
 0x515   :  { %v2040_v54 = vrot.slane %v2033_v11, %v2665_v31  ;;  %v2048_v19 = vrot.slane %v2254_v48, %v2665_v31  ;;  %v2056_v24 = vrot.slane %v2049_v51, %v2665_v31  ;;  %v2064_v55 = vrot.slane %v2255_v52, %v2665_v31  ;;  %v2447_v31 = vld [vmem:[#allocation7] sm:$0xff]  }
 0x516   :  { %2405 = vmatpush3.bf16.msra.mxu1 %v2447_v31 }
 0x517   :  { %v2066_v16 = vcombine.high %v2040_v54, %v2048_v19  ;;  %v2082_v59 = vcombine.high %v2056_v24, %v2064_v55  ;;  %v2065_v15 = vcombine.low %v2040_v54, %v2048_v19  ;;  %v2081_v60 = vcombine.low %v2056_v24, %v2064_v55 }
 0x519   :  { %v2080_v14 = vrot.slane %v2066_v16, %v2669_v40  ;;  %v2096_v61 = vrot.slane %v2082_v59, %v2669_v40  ;;  %v2073_v58 = vrot.slane %v2065_v15, %v2669_v40  ;;  %v2089_v1 = vrot.slane %v2081_v60, %v2669_v40 }
 0x51b   :  { %v2099_v5 = vcombine.low %v2080_v14, %v2096_v61  ;;  %v2098_v8 = vcombine.high %v2073_v58, %v2089_v1  ;;  %v2097_v10 = vcombine.low %v2073_v58, %v2089_v1  ;;  %v2100_v0 = vcombine.high %v2080_v14, %v2096_v61 }
 0x51d   :  { %v2434_v12 = vpack.i.bf16 %v2099_v5, %v2031_v3  ;;  %v2429_v62 = vpack.i.bf16 %v2098_v8, %v2030_v7  ;;  %v2439_v17 = vpack.i.bf16 %v2100_v0, %v2032_v63 }
 0x51f   :  { %2435 = vrot.lane.b32.xlu0 %v2434_v12, %s2582_s9  ;;  %2430 = vrot.lane.b32.xlu1 %v2429_v62, %s2571_s26 }
 0x523   :  { %2440 = vrot.lane.b32.xlu1 %v2439_v17, %s2583_s10 }
 0x591   :  { %v2436_v40 = vpop.permute.xlu0 %2435  ;;  %v2431_v18 = vpop.permute.xlu1 %2430 }
 0x592   :  { %v2433_v46 = vunpack.i.h.bf16 %v2431_v18  ;;  %v2432_v26 = vunpack.i.l.bf16 %v2431_v18  ;;  %v2438_v20 = vunpack.i.h.bf16 %v2436_v40  ;;  %v2437_v21 = vunpack.i.l.bf16 %v2436_v40 }
 0x594   :  { %v2125_v49 = vsel %vm980_vm2, %v2029_v32, %v2432_v26  ;;  %v2126_v13 = vsel %vm980_vm2, %v2097_v10, %v2433_v46 }
 0x595   :  { %v2441_v23 = vpop.permute.xlu1 %2440  ;;  %v2128_v33 = vsel %vm2127_vm5, %v2125_v49, %v2437_v21  ;;  %v2129_v22 = vsel %vm2127_vm5, %v2126_v13, %v2438_v20 }
 0x596   :  { %v2443_v2 = vunpack.i.h.bf16 %v2441_v23  ;;  %v2442_v6 = vunpack.i.l.bf16 %v2441_v23 }
 0x598   :  { %v2131_v34 = vsel %vm2130_vm6, %v2128_v33, %v2442_v6  ;;  %v2132_v35 = vsel %vm2130_vm6, %v2129_v22, %v2443_v2 }
 0x599   :  { %v2133_v4 = vpack.c.bf16 %v2132_v35, %v2131_v34 }
 0x59b   :  { %2407 = vmatmul.mubr.msk.bf16.vlgmr.msra.gmra.mxu1 %vm79_vm1, %v2133_v4 }
 0x65b   :  { %v2194_v30 = vpop.f32.mrf.mxu1 }
 0x65c   :  { %v2195_v32 = vadd.f32 %v2256_v28, %v2194_v30 }
 0x65d   :  { %v2408_v36 = vpop.f32.mrf.mxu1 }
 0x65e   :  { %2201 = vst.msk [vmem:[#allocation8] sm:$0xff] %vm79_vm1, %v2195_v32 }
 0x65f   :  { %v2197_v29 = vpop.f32.mrf.mxu1 }
 0x660   :  { %v2198_v37 = vadd.f32 %v2256_v28, %v2197_v29 }
 0x661   :  { %v2409_v38 = vpop.f32.mrf.mxu1 }
 0x662   :  { %2202 = vst.msk [vmem:[#allocation8 + $0x8] sm:$0xff] %vm79_vm1, %v2198_v37 }
 0x663   :  { %2551 = shalt.err (!%p2548_p5)
}
 0x664   :  { %2214 = dma.vmem_to_hbm [thread:$0]  %s2209_s14, 256, %s3026_s4, [#allocation4], %s2570_s25, %s2570_s25, %s2571_s26  }
 0x665   :  { %2564 = dma.done.wait [#allocation4], 256  }
 0x666   :  { %2565 = vsyncadd [#allocation4], 4294967040 }
 0x667   :  { %2218 = vsyncpa [#allocation3], 1 }
 0x668   :  { %2219 = vsyncpa [#allocation6], 1 }
 0x669   :  { %2220 = vsyncpa [#allocation4], 1 }

</bundles_post_ra>
